<compile_context>
chip_gen: v6e
topology: v6e:2x2x1
jax: 0.10.0
libtpu: 0.0.40
codegen_flags: <defaults>
</compile_context>

<pallas_src>
import functools
from typing import NamedTuple, Optional

import jax
import jax.numpy as jnp
from jax.experimental import pallas as pl
from jax.experimental.pallas import tpu as pltpu


def _round_up(v, m):
    return (v + m - 1) // m * m


def _sublane(dtype):
    # Native sublane tile: 8 for 32-bit, 16 for bf16, 32 for int8/fp8.
    return max(8, 32 // jnp.dtype(dtype).itemsize)


# ------------------------------- kernels ------------------------------------


def _lora_kernel(x_ref, wT_ref, mid_ref, bT_ref, o_ref, acc_ref):
    # x_ref: [tm, tk]   wT_ref: [tk, tn]   mid_ref: [tm, R]   bT_ref: [R, tn]
    # acc_ref: [tm, tn] f32 accumulator, resident across the k grid axis.
    @pl.when(pl.program_id(2) == 0)
    def _init():
        # Seed the accumulator with the rank-R up-projection (scaling already
        # folded into bT) instead of zeros: drops a [tm,tn] zeros store and a
        # [tm,tn] add, and moves the tiny matmul off the pipeline drain.
        acc_ref[...] = jnp.dot(mid_ref[...], bT_ref[...],
                               preferred_element_type=jnp.float32)

    acc_ref[...] += jnp.dot(x_ref[...], wT_ref[...],
                            preferred_element_type=jnp.float32)

    @pl.when(pl.program_id(2) == pl.num_programs(2) - 1)
    def _finalize():
        o_ref[...] = acc_ref[...].astype(o_ref.dtype)


def _plain_kernel(x_ref, wT_ref, o_ref, acc_ref):
    # r == 0 path: plain linear, no LoRA machinery at all.
    @pl.when(pl.program_id(2) == 0)
    def _init():
        acc_ref[...] = jnp.zeros_like(acc_ref)

    acc_ref[...] += jnp.dot(x_ref[...], wT_ref[...],
                            preferred_element_type=jnp.float32)

    @pl.when(pl.program_id(2) == pl.num_programs(2) - 1)
    def _finalize():
        o_ref[...] = acc_ref[...].astype(o_ref.dtype)


# ------------------------------ parameters ----------------------------------


class LoRAParams(NamedTuple):
    wT: jax.Array              # [Kp, Np]  padded, pre-transposed base weight
    aT: Optional[jax.Array]    # [K,  R]   pre-transposed lora_A (or None)
    bT: Optional[jax.Array]    # [R,  Np]  padded, scaling * lora_B.T (or None)
    out_features: int          # original N
    in_features: int           # original K
    tn: int
    tk: int


def prepare_lora_params(weight, lora_A, lora_B, scaling, *,
                        tn=1024, tk=512, dtype=None):
    """One-time parameter prep (outside the hot path).

    Transposes, folds `scaling` into B^T and zero-pads the weight matrices to
    the tile multiples used by the kernel, so no per-call padding pass over the
    (large) weight is needed.  Optionally casts to `dtype` (e.g. bf16) for
    MXU-rate / HBM-bandwidth wins; accumulation stays f32 in the kernel.
    """
    weight = jnp.asarray(weight)
    if dtype is not None:
        weight = weight.astype(dtype)
    N, K = weight.shape
    tn = min(tn, _round_up(N, 128))
    tk = min(tk, _round_up(K, 128))
    Kp, Np = _round_up(K, tk), _round_up(N, tn)
    wT = weight.T                                        # [K, N]
    if (Kp, Np) != (K, N):
        wT = jnp.pad(wT, ((0, Kp - K), (0, Np - N)))

    if lora_A is None or lora_B is None:
        return LoRAParams(wT, None, None, N, K, tn, tk)

    lora_A = jnp.asarray(lora_A)
    lora_B = jnp.asarray(lora_B)
    if dtype is not None:
        lora_A = lora_A.astype(dtype)
        lora_B = lora_B.astype(dtype)
    aT = lora_A.T                                        # [K, R]  (tiny)
    bT = (scaling * lora_B.T).astype(lora_B.dtype)       # [R, N], scaling folded
    if Np != N:
        bT = jnp.pad(bT, ((0, 0), (0, Np - N)))
    return LoRAParams(wT, aT, bT, N, K, tn, tk)


# -------------------------------- forward -----------------------------------


@functools.partial(jax.jit, static_argnames=("N", "K", "tn", "tk", "tm"))
def _lora_forward(x, wT, aT, bT, *, N, K, tn, tk, tm):
    orig_shape = x.shape
    x2d = x.reshape(-1, K)
    M = x2d.shape[0]
    Kp, Np = wT.shape

    # Decode-friendly clamp: for small M a single i block means W^T streams
    # from HBM exactly once per call (memory-optimal schedule for M << N, K).
    tm = min(tm, _round_up(M, _sublane(x2d.dtype)))
    Mp = _round_up(M, tm)

    # v7x has 2 TensorCores sharded over the "parallel" grid axes; if the
    # (i, j) grid collapsed to one block, split tn so >= 2 blocks are exposed.
    if (Mp // tm) * (Np // tn) < 2:
        half = tn // 2
        if half >= 128 and half % 128 == 0 and Np % half == 0 and Np // half >= 2:
            tn = half

    # Rank-R down-projection (tiny: M*K*R flops) computed once in XLA from the
    # UNPADDED activations, so it is never recomputed per N tile and never
    # mixed into the K reduction.
    if aT is not None:
        R = aT.shape[1]
        mid = jnp.dot(x2d, aT,
                      preferred_element_type=jnp.float32).astype(x2d.dtype)

    # Zero-pad activations to tile multiples (exact for matmul; sliced off).
    if (Mp, Kp) != (M, K):
        x2d = jnp.pad(x2d, ((0, Mp - M), (0, Kp - K)))
    if aT is not None and Mp != M:
        mid = jnp.pad(mid, ((0, Mp - M), (0, 0)))

    grid = (Mp // tm, Np // tn, Kp // tk)
    itemsize = jnp.dtype(x2d.dtype).itemsize

    # VMEM budget: double-buffered in/out tiles + f32 accumulator scratch.
    vmem_bytes = 2 * (tm * tk + tk * tn + tm * tn) * itemsize + tm * tn * 4
    flops = 2 * M * N * K
    bytes_accessed = (x2d.size + wT.size + Mp * Np) * itemsize

    in_arrays = [x2d, wT]
    in_specs = [
        pl.BlockSpec((tm, tk), lambda i, j, k: (i, k)),    # activations
        pl.BlockSpec((tk, tn), lambda i, j, k: (k, j)),    # base weight^T
    ]
    if aT is not None:
        in_arrays += [mid, bT]
        in_specs += [
            pl.BlockSpec((tm, R), lambda i, j, k: (i, 0)),  # low-rank mid
            pl.BlockSpec((R, tn), lambda i, j, k: (0, j)),  # scaled B^T
        ]
        r_pad = _round_up(R, 128)
        vmem_bytes += 2 * (tm * r_pad + r_pad * tn) * itemsize
        flops += 2 * M * R * N
        bytes_accessed += (mid.size + bT.size) * itemsize

    # Explicit VMEM limit so the config is portable across v5e/v6e/v7x scoped
    # defaults (16/32/32 MiB); headroom but never above physical budgets.
    vmem_limit = min(100 * 1024 * 1024,
                     max(32 * 1024 * 1024, int(1.5 * vmem_bytes)))

    kernel = _plain_kernel if aT is None else _lora_kernel
    out = pl.pallas_call(
        kernel,
        out_shape=jax.ShapeDtypeStruct((Mp, Np), x2d.dtype),
        grid_spec=pltpu.PrefetchScalarGridSpec(
            num_scalar_prefetch=0,
            grid=grid,
            in_specs=in_specs,
            out_specs=pl.BlockSpec((tm, tn), lambda i, j, k: (i, j)),
            scratch_shapes=[pltpu.VMEM((tm, tn), jnp.float32)],
        ),
        compiler_params=pltpu.CompilerParams(
            dimension_semantics=("parallel", "parallel", "arbitrary"),
            vmem_limit_bytes=vmem_limit),
        cost_estimate=pl.CostEstimate(
            flops=flops, transcendentals=0, bytes_accessed=bytes_accessed),
    )(*in_arrays)

    out = out[:M, :N]
    return out.reshape(*orig_shape[:-1], N)


def lora_linear(x, params: LoRAParams, *, tm=512):
    """LoRALinear forward: x @ W^T + scaling * ((x @ A^T) @ B^T)."""
    return _lora_forward(x, params.wT, params.aT, params.bT,
                         N=params.out_features, K=params.in_features,
                         tn=params.tn, tk=params.tk, tm=tm)


# --------------------------------- test -------------------------------------


def _kaiming_uniform(key, shape, a=jnp.sqrt(5.0)):
    # Matches nn.init.kaiming_uniform_: bound = gain * sqrt(3 / fan_in),
    # gain = sqrt(2 / (1 + a^2)); for a = sqrt(5) -> bound = 1/sqrt(fan_in).
    fan_in = shape[1]
    gain = jnp.sqrt(2.0 / (1.0 + a * a))
    bound = gain * jnp.sqrt(3.0 / fan_in)
    return jax.random.uniform(key, shape, jnp.float32, -bound, bound)


def _reference(x, weight, lora_A, lora_B, scaling):
    out = x @ weight.T
    if lora_A is not None:
        out = out + scaling * ((x @ lora_A.T) @ lora_B.T)
    return out


if __name__ == "__main__":
    key = jax.random.PRNGKey(0)
    k_x, k_w, k_a, k_b, k_x2, k_w2, k_a2, k_b2 = jax.random.split(key, 8)

    # ---- Small-shape correctness check (module-consistent shapes) ----
    batch, seq = 2, 8
    in_features, out_features, r = 32, 32, 16
    lora_alpha = 1.0
    scaling = lora_alpha / r

    x = jax.random.normal(k_x, (batch, seq, in_features), jnp.float32)
    weight = _kaiming_uniform(k_w, (out_features, in_features))
    lora_A = _kaiming_uniform(k_a, (r, in_features))
    # PyTorch inits lora_B to zeros; use small random values so the LoRA path
    # is exercised numerically (deterministic from PRNGKey(0)).
    lora_B = 0.01 * jax.random.normal(k_b, (out_features, r), jnp.float32)

    params = prepare_lora_params(weight, lora_A, lora_B, scaling)
    out = jax.block_until_ready(lora_linear(x, params))
    ref = _reference(x, weight, lora_A, lora_B, scaling)
    assert out.shape == (batch, seq, out_features)
    assert jnp.allclose(out, ref, atol=2e-4, rtol=2e-4), "small-shape mismatch"

    # ---- r == 0 path: plain-linear kernel dispatch ----
    params0 = prepare_lora_params(weight, None, None, None)
    out0 = jax.block_until_ready(lora_linear(x, params0))
    ref0 = _reference(x, weight, None, None, None)
    assert jnp.allclose(out0, ref0, atol=2e-4, rtol=2e-4), "r==0 path mismatch"

    # ---- Tiling-path check: multiple N tiles and multiple k reduction steps ----
    b2, s2, inf2, outf2, r2 = 2, 64, 256, 256, 16
    scaling2 = lora_alpha / r2
    x2 = jax.random.normal(k_x2, (b2, s2, inf2), jnp.float32)
    w2 = _kaiming_uniform(k_w2, (outf2, inf2))
    a2 = _kaiming_uniform(k_a2, (r2, inf2))
    b2w = 0.01 * jax.random.normal(k_b2, (outf2, r2), jnp.float32)

    params2 = prepare_lora_params(w2, a2, b2w, scaling2, tn=128, tk=128)
    out2 = jax.block_until_ready(lora_linear(x2, params2, tm=128))  # grid (1,2,2)
    ref2 = _reference(x2, w2, a2, b2w, scaling2)
    assert out2.shape == (b2, s2, outf2)
    assert jnp.allclose(out2, ref2, atol=5e-4, rtol=5e-4), "tiled-shape mismatch"

    print("KERNEL_OK")
</pallas_src>

<mosaic_0001>
module attributes {stable_mosaic.version = 11 : i64} {
  func.func @_lora_kernel(%arg0: i32, %arg1: i32, %arg2: i32, %arg3: memref<16x128xf32, #tpu.memory_space<vmem>>, %arg4: memref<128x128xf32, #tpu.memory_space<vmem>>, %arg5: memref<16x16xf32, #tpu.memory_space<vmem>>, %arg6: memref<16x128xf32, #tpu.memory_space<vmem>>, %arg7: memref<16x128xf32, #tpu.memory_space<vmem>>, %arg8: memref<16x128xf32, #tpu.memory_space<vmem>>) attributes {dimension_semantics = [#tpu.dimension_semantics<parallel>, #tpu.dimension_semantics<parallel>, #tpu.dimension_semantics<arbitrary>], iteration_bounds = array<i64: 1, 1, 1>, scalar_prefetch = 0 : i64, scratch_operands = 1 : i64, tpu.core_type = #tpu.core_type<tc>, window_params = [{transform_indices = @transform_0, window_bounds = array<i64: 16, 128>}, {transform_indices = @transform_1, window_bounds = array<i64: 128, 128>}, {transform_indices = @transform_2, window_bounds = array<i64: 16, 16>}, {transform_indices = @transform_3, window_bounds = array<i64: 16, 128>}, {transform_indices = @transform_4, window_bounds = array<i64: 16, 128>}]} {
    %c0_i32 = arith.constant 0 : i32
    %0 = arith.cmpi eq, %arg2, %c0_i32 : i32
    %1 = arith.extui %0 : i1 to i32
    %c0_i32_0 = arith.constant 0 : i32
    %2 = arith.cmpi ne, %1, %c0_i32_0 : i32
    scf.if %2 {
      %c0_10 = arith.constant 0 : index
      %c0_11 = arith.constant 0 : index
      %12 = vector.load %arg5[%c0_10, %c0_11] : memref<16x16xf32, #tpu.memory_space<vmem>>, vector<16x16xf32>
      %c0_12 = arith.constant 0 : index
      %c0_13 = arith.constant 0 : index
      %13 = vector.load %arg6[%c0_12, %c0_13] : memref<16x128xf32, #tpu.memory_space<vmem>>, vector<16x128xf32>
      %cst_14 = arith.constant dense<0.000000e+00> : vector<16x128xf32>
      %14 = tpu.matmul %12, %13, %cst_14 {dimension_numbers = #tpu.dot_dimension_numbers<[1], [0], [0], [1], [0, 0, 1, 1], [], []>} : vector<16x16xf32>, vector<16x128xf32>, vector<16x128xf32> -> vector<16x128xf32>
      %c0_15 = arith.constant 0 : index
      %c0_16 = arith.constant 0 : index
      %15 = vector.load %arg8[%c0_15, %c0_16] : memref<16x128xf32, #tpu.memory_space<vmem>>, vector<16x128xf32>
      tpu.vector_store %arg8[%c0_15, %c0_16], %14 {strides = array<i32>} : memref<16x128xf32, #tpu.memory_space<vmem>>, vector<16x128xf32>,
    } else {
    }
    %c0 = arith.constant 0 : index
    %c0_1 = arith.constant 0 : index
    %3 = vector.load %arg8[%c0, %c0_1] : memref<16x128xf32, #tpu.memory_space<vmem>>, vector<16x128xf32>
    %c0_2 = arith.constant 0 : index
    %c0_3 = arith.constant 0 : index
    %4 = vector.load %arg3[%c0_2, %c0_3] : memref<16x128xf32, #tpu.memory_space<vmem>>, vector<16x128xf32>
    %c0_4 = arith.constant 0 : index
    %c0_5 = arith.constant 0 : index
    %5 = vector.load %arg4[%c0_4, %c0_5] : memref<128x128xf32, #tpu.memory_space<vmem>>, vector<128x128xf32>
    %cst = arith.constant dense<0.000000e+00> : vector<16x128xf32>
    %6 = tpu.matmul %4, %5, %cst {dimension_numbers = #tpu.dot_dimension_numbers<[1], [0], [0], [1], [0, 0, 1, 1], [], []>} : vector<16x128xf32>, vector<128x128xf32>, vector<16x128xf32> -> vector<16x128xf32>
    %7 = arith.addf %3, %6 : vector<16x128xf32>
    %c0_6 = arith.constant 0 : index
    %c0_7 = arith.constant 0 : index
    %8 = vector.load %arg8[%c0_6, %c0_7] : memref<16x128xf32, #tpu.memory_space<vmem>>, vector<16x128xf32>
    tpu.vector_store %arg8[%c0_6, %c0_7], %7 {strides = array<i32>} : memref<16x128xf32, #tpu.memory_space<vmem>>, vector<16x128xf32>,
    %c0_i32_8 = arith.constant 0 : i32
    %9 = arith.cmpi eq, %arg2, %c0_i32_8 : i32
    %10 = arith.extui %9 : i1 to i32
    %c0_i32_9 = arith.constant 0 : i32
    %11 = arith.cmpi ne, %10, %c0_i32_9 : i32
    scf.if %11 {
      %c0_10 = arith.constant 0 : index
      %c0_11 = arith.constant 0 : index
      %12 = vector.load %arg8[%c0_10, %c0_11] : memref<16x128xf32, #tpu.memory_space<vmem>>, vector<16x128xf32>
      %c0_12 = arith.constant 0 : index
      %c0_13 = arith.constant 0 : index
      %13 = vector.load %arg7[%c0_12, %c0_13] : memref<16x128xf32, #tpu.memory_space<vmem>>, vector<16x128xf32>
      tpu.vector_store %arg7[%c0_12, %c0_13], %12 {strides = array<i32>} : memref<16x128xf32, #tpu.memory_space<vmem>>, vector<16x128xf32>,
    } else {
    }
    return
  }
  func.func @transform_0(%arg0: i32, %arg1: i32, %arg2: i32) -> (i32, i32) {
    %c0_i32 = arith.constant 0 : i32
    return %arg0, %arg2 : i32, i32
  }
  func.func @transform_1(%arg0: i32, %arg1: i32, %arg2: i32) -> (i32, i32) {
    %c0_i32 = arith.constant 0 : i32
    return %arg2, %arg1 : i32, i32
  }
  func.func @transform_2(%arg0: i32, %arg1: i32, %arg2: i32) -> (i32, i32) {
    %c0_i32 = arith.constant 0 : i32
    %c0_i32_0 = arith.constant 0 : i32
    return %arg0, %c0_i32 : i32, i32
  }
  func.func @transform_3(%arg0: i32, %arg1: i32, %arg2: i32) -> (i32, i32) {
    %c0_i32 = arith.constant 0 : i32
    %c0_i32_0 = arith.constant 0 : i32
    return %c0_i32, %arg1 : i32, i32
  }
  func.func @transform_4(%arg0: i32, %arg1: i32, %arg2: i32) -> (i32, i32) {
    %c0_i32 = arith.constant 0 : i32
    return %arg0, %arg1 : i32, i32
  }
}

</mosaic_0001>

<bundles_post_ra>
// kernel: _lora_forward.1
= control target key start
LH: loop header
LB: loop body
LE: loop exit
PB: predicated region body
PF: predicated region fallthrough
CT: control target
= control target key end

     0   :  { %9 = vsyncpa [#allocation4], 0  ;;  %s325_s15 = smov [#allocation3]   ;;  %s380_s0 = inlined_call_operand.vmem [shape: f32[16,128], index: 0, kind: input, shape index: {}]   ;;  %s381_s1 = inlined_call_operand.hbm [shape: f32[128,128], index: 1, kind: input, shape index: {}]   ;;  %s382_s2 = inlined_call_operand.vmem [shape: f32[16,16], index: 2, kind: input, shape index: {}]   ;;  %s383_s3 = inlined_call_operand.vmem [shape: f32[16,128], index: 3, kind: input, shape index: {}]   ;;  %s384_s4 = inlined_call_operand.vmem [shape: f32[16,128], index: 4, kind: output, shape index: {}]  }
   0x1   :  { %s17_s16 = sshll.u32 %s325_s15, 4  ;;  %s18_s16 = int_to_ptr.vmem [resolvable:$true] %s17_s16 }
   0x2   :  { %s311_s17 = scalar_lea.vmem %s18_s16, 2048  ;;  %p316_p1 = scmp.lt.s32.totalorder %s18_s16, %s18_s16 }
   0x3   :  { %p312_p0 = scmp.ne.s32.totalorder %s18_s16, %s311_s17  ;;  %p317_p2 = scmp.lt.s32.totalorder %s311_s17, %s311_s17 }
   0x5   :  { %p318_p3 = por %p317_p2, %p316_p1 }
   0x7   :  { %p319_p4 = pnand %p318_p3, %p312_p0 }
   0x9   :  { %322 = shalt.err (!%p319_p4)
}
   0xa   :  { %s326_s18 = smov 128   ;;  %s327_s19 = smov 8  }
   0xb   :  { %23 = dma.hbm_to_vmem [thread:$0]  %s381_s1, 2048, %s18_s16, [#allocation4], %s326_s18, %s326_s18, %s327_s19  }
   0xc   :  { %323 = dma.done.wait [#allocation4], 2048  }
   0xd   :  { %324 = vsyncadd [#allocation4], 4294965248  ;;  %v142_v0 = vld [vmem:[#allocation3 + $0x78] sm:$0xff]  ;;  %v141_v1 = vld [vmem:[#allocation3 + $0x70] sm:$0xff]  ;;  %vm39_vm0 = vcmask 130048  }
   0xe   :  { %265 = vmatprep.subr.mxu1 %v142_v0  ;;  %v140_v2 = vld [vmem:[#allocation3 + $0x68] sm:$0xff]  ;;  %v139_v3 = vld [vmem:[#allocation3 + $0x60] sm:$0xff]  ;;  %v138_v6 = vld [vmem:[#allocation3 + $0x58] sm:$0xff] }
   0xf   :  { %266 = vmatpush3.msra.mxu1 %v142_v0  ;;  %v38_v4 = vld [vmem:[%s383_s3 + $0x8] sm:$0xff]  ;;  %v37_v5 = vld [vmem:[%s383_s3] sm:$0xff]  ;;  %v137_v9 = vld [vmem:[#allocation3 + $0x50] sm:$0xff] }
  0x10   :  { %267 = vmatprep.subr.mxu1 %v141_v1  ;;  %258 = vmatprep.subr.mxu0 %v38_v4  ;;  %v35_v7 = vld [vmem:[%s382_s2] sm:$0xff]  ;;  %v36_v8 = vld [vmem:[%s382_s2 + $0x8] sm:$0xff]  ;;  %v134_v13 = vld [vmem:[#allocation3 + $0x38] sm:$0xff] }
  0x11   :  { %268 = vmatpush3.msra.mxu1 %v141_v1  ;;  %259 = vmatpush3.msra.mxu0 %v38_v4  ;;  %v125_v10 = vld [vmem:[%s380_s0] sm:$0xff]  ;;  %v136_v11 = vld [vmem:[#allocation3 + $0x48] sm:$0xff]  ;;  %v133_v14 = vld [vmem:[#allocation3 + $0x30] sm:$0xff] }
  0x12   :  { %269 = vmatprep.subr.mxu1 %v140_v2  ;;  %260 = vmatprep.subr.mxu0 %v37_v5  ;;  %v135_v12 = vld [vmem:[#allocation3 + $0x40] sm:$0xff]  ;;  %v132_v15 = vld [vmem:[#allocation3 + $0x28] sm:$0xff]  ;;  %v130_v17 = vld [vmem:[#allocation3 + $0x18] sm:$0xff] }
  0x13   :  { %270 = vmatpush3.msra.mxu1 %v140_v2  ;;  %261 = vmatpush3.msra.mxu0 %v37_v5  ;;  %v131_v16 = vld [vmem:[#allocation3 + $0x20] sm:$0xff]  ;;  %v129_v18 = vld [vmem:[#allocation3 + $0x10] sm:$0xff]  ;;  %v128_v19 = vld [vmem:[#allocation3 + $0x8] sm:$0xff] }
  0x14   :  { %271 = vmatprep.subr.mxu1 %v139_v3  ;;  %262 = vmatprep.mubr.msk.f32.mxu0 %vm39_vm0, %v35_v7  ;;  %v127_v20 = vld [vmem:[#allocation3] sm:$0xff]  ;;  %v126_v21 = vld [vmem:[%s380_s0 + $0x8] sm:$0xff] }
  0x15   :  { %272 = vmatpush3.msra.mxu1 %v139_v3  ;;  %263 = vmatmul.mubr.msk.f32.vlgmr.msra.gmra.mxu0 %vm39_vm0, %v36_v8 }
  0x16   :  { %273 = vmatprep.subr.mxu1 %v138_v6  ;;  %297 = vmatprep.mubr.f32.mxu1 %v125_v10 }
  0x17   :  { %274 = vmatpush3.msra.mxu1 %v138_v6 }
  0x18   :  { %275 = vmatprep.subr.mxu1 %v137_v9 }
  0x19   :  { %276 = vmatpush3.msra.mxu1 %v137_v9 }
  0x1a   :  { %277 = vmatprep.subr.mxu1 %v136_v11 }
  0x1b   :  { %278 = vmatpush3.msra.mxu1 %v136_v11 }
  0x1c   :  { %279 = vmatprep.subr.mxu1 %v135_v12 }
  0x1d   :  { %280 = vmatpush3.msra.mxu1 %v135_v12 }
  0x1e   :  { %281 = vmatprep.subr.mxu1 %v134_v13 }
  0x1f   :  { %282 = vmatpush3.msra.mxu1 %v134_v13 }
  0x20   :  { %283 = vmatprep.subr.mxu1 %v133_v14 }
  0x21   :  { %284 = vmatpush3.msra.mxu1 %v133_v14 }
  0x22   :  { %285 = vmatprep.subr.mxu1 %v132_v15 }
  0x23   :  { %286 = vmatpush3.msra.mxu1 %v132_v15 }
  0x24   :  { %287 = vmatprep.subr.mxu1 %v131_v16 }
  0x25   :  { %288 = vmatpush3.msra.mxu1 %v131_v16 }
  0x26   :  { %289 = vmatprep.subr.mxu1 %v130_v17 }
  0x27   :  { %290 = vmatpush3.msra.mxu1 %v130_v17 }
  0x28   :  { %291 = vmatprep.subr.mxu1 %v129_v18 }
  0x29   :  { %292 = vmatpush3.msra.mxu1 %v129_v18 }
  0x2a   :  { %293 = vmatprep.subr.mxu1 %v128_v19 }
  0x2b   :  { %294 = vmatpush3.msra.mxu1 %v128_v19 }
  0x2c   :  { %295 = vmatprep.subr.mxu1 %v127_v20 }
  0x2d   :  { %296 = vmatpush3.msra.mxu1 %v127_v20 }
  0x2e   :  { %298 = vmatmul.mubr.f32.vlgmr.msra.gmra.mxu1 %v126_v21 }
  0xd5   :  { %v264_v22 = vpop.f32.mrf.mxu0 }
  0xd7   :  { %v112_v25 = vpop.f32.mrf.mxu0 }
  0xee   :  { %v299_v23 = vpop.f32.mrf.mxu1 }
  0xef   :  { %v219_v24 = vadd.f32 %v299_v23, %v264_v22 }
  0xf0   :  { %v209_v26 = vpop.f32.mrf.mxu1 }
  0xf1   :  { %228 = vst [vmem:[%s384_s4 + $0x8] sm:$0xff] %v219_v24  ;;  %v218_v27 = vadd.f32 %v209_v26, %v112_v25 }
  0xf3   :  { %227 = vst [vmem:[%s384_s4] sm:$0xff] %v218_v27 }
  0xf4   :  { %233 = vsyncpa [#allocation4], 1 }

</bundles_post_ra>
